<compile_context>
chip_gen: v7x
topology: tpu7x:2x2x1
jax: 0.10.0
libtpu: 0.0.40
codegen_flags: <defaults>
</compile_context>

<pallas_src>
import functools

import numpy as np
import jax
import jax.numpy as jnp
from jax.experimental import pallas as pl
from jax.experimental.pallas import tpu as pltpu


def _ata_kernel(x_ref, sr_ref, si_ref, m_ref,
                fhf_ref, fhinv_ref, bdr_ref, bdi_ref, red_ref,
                out_ref):
    H = out_ref.shape[2]

    xr = x_ref[0, 0]            # (H, CW)  image real, tiled per coil on lanes
    xi = x_ref[0, 1]            # (H, CW)  image imag
    sr = sr_ref[0]              # (H, CW)  csm real  (coil-major lane layout)
    si = si_ref[0]              # (H, CW)  csm imag
    m = m_ref[...]              # (H, CW)  k-space mask, tiled per coil

    fhf = fhf_ref[...]          # (2H, 2H) forward H-transform block matrix
    fhinv = fhinv_ref[...]      # (2H, 2H) inverse (conjugated) H-transform
    bdr = bdr_ref[...]          # (CW, CW) block-diag Re(F_W) per coil
    bdi = bdi_ref[...]          # (CW, CW) block-diag Im(F_W) per coil
    red = red_ref[...]          # (CW, W)  coil-sum reduction matrix

    def mm(a, b):
        return jnp.dot(a, b, preferred_element_type=jnp.float32)

    # expand_operator: coil image = x * csm (complex mul), all coils at once.
    cr = xr * sr - xi * si
    ci = xr * si + xi * sr
    s = jnp.concatenate([cr, ci], axis=0)          # (2H, CW) = [Re; Im]

    # fft along H (rows): T = F_H @ C   (block complex form, 1 matmul)
    t = mm(fhf, s)                                 # (2H, CW) = [Tr; Ti]

    # fft along W (lanes, per coil): K = T @ F_W
    p = mm(t, bdr)                                 # [Tr@Fr; Ti@Fr]
    q = mm(t, bdi)                                 # [Tr@Fi; Ti@Fi]
    kr = p[:H] - q[H:]
    ki = q[:H] + p[H:]

    # k-space undersampling mask
    kr = kr * m
    ki = ki * m

    # ifft along W: U = K @ conj(F_W)
    k = jnp.concatenate([kr, ki], axis=0)          # (2H, CW)
    p2 = mm(k, bdr)
    q2 = mm(k, bdi)
    ur = p2[:H] + q2[H:]
    ui = p2[H:] - q2[:H]

    # ifft along H: Y = conj(F_H) @ U   (pre-conjugated block matrix)
    u = jnp.concatenate([ur, ui], axis=0)          # (2H, CW)
    y = mm(fhinv, u)                               # (2H, CW) = [Yr; Yi]
    yr = y[:H]
    yi = y[H:]

    # reduce_operator: sum_coils( y * conj(csm) ), coil-sum as one matmul.
    pr = yr * sr + yi * si
    pi = yi * sr - yr * si
    prod = jnp.concatenate([pr, pi], axis=0)       # (2H, CW)
    res = mm(prod, red)                            # (2H, W) = [out_r; out_i]

    out_ref[0, 0] = res[:H]
    out_ref[0, 1] = res[H:]


def _constants(H, W, C):
    """Trace-time (numpy) constants: ortho DFT block matrices + helpers."""
    def dft(n):
        j = np.arange(n)[:, None].astype(np.float64)
        k = np.arange(n)[None, :].astype(np.float64)
        ang = 2.0 * np.pi * j * k / n
        s = 1.0 / np.sqrt(n)
        return (np.cos(ang) * s).astype(np.float32), (-np.sin(ang) * s).astype(np.float32)

    fhr, fhi = dft(H)
    fwr, fwi = dft(W)

    # Left (H-axis) complex transforms in real block form.
    fh_fwd = np.block([[fhr, -fhi], [fhi, fhr]]).astype(np.float32)   # F_H
    fh_inv = np.block([[fhr, fhi], [-fhi, fhr]]).astype(np.float32)   # conj(F_H)

    # Right (W-axis) transforms, block-diagonal over coils (coil-major lanes).
    eye_c = np.eye(C, dtype=np.float32)
    bd_wr = np.kron(eye_c, fwr).astype(np.float32)                    # (CW, CW)
    bd_wi = np.kron(eye_c, fwi).astype(np.float32)

    # Coil-sum reduction matrix: (CW, W) stacked identities.
    red = np.tile(np.eye(W, dtype=np.float32), (C, 1))

    return (jnp.asarray(fh_fwd), jnp.asarray(fh_inv),
            jnp.asarray(bd_wr), jnp.asarray(bd_wi), jnp.asarray(red))


@jax.jit
def my_ata(xk, csm_r, csm_i, mask):
    """xk: (B,2,H,W) f32; csm_r/csm_i: (B,C,H,W) f32; mask: (H,W) f32 -> (B,2,H,W) f32."""
    B, two, H, W = xk.shape
    assert two == 2
    C = csm_r.shape[1]
    CW = C * W

    fh_fwd, fh_inv, bd_wr, bd_wi, red = _constants(H, W, C)

    # Lane-dense working layout: coils stacked along the lane axis (coil-major).
    x_slab = jnp.tile(xk, (1, 1, 1, C))                               # (B,2,H,CW)
    csm_r_slab = csm_r.transpose(0, 2, 1, 3).reshape(B, H, CW)        # (B,H,CW)
    csm_i_slab = csm_i.transpose(0, 2, 1, 3).reshape(B, H, CW)
    mask_slab = jnp.tile(mask, (1, C))                                # (H,CW)

    grid_spec = pltpu.PrefetchScalarGridSpec(
        num_scalar_prefetch=0,
        grid=(B,),
        in_specs=[
            pl.BlockSpec((1, 2, H, CW), lambda b: (b, 0, 0, 0)),      # x slab
            pl.BlockSpec((1, H, CW), lambda b: (b, 0, 0)),            # csm real slab
            pl.BlockSpec((1, H, CW), lambda b: (b, 0, 0)),            # csm imag slab
            pl.BlockSpec((H, CW), lambda b: (0, 0)),                  # mask slab
            pl.BlockSpec((2 * H, 2 * H), lambda b: (0, 0)),           # F_H forward block
            pl.BlockSpec((2 * H, 2 * H), lambda b: (0, 0)),           # F_H inverse block
            pl.BlockSpec((CW, CW), lambda b: (0, 0)),                 # blockdiag Re(F_W)
            pl.BlockSpec((CW, CW), lambda b: (0, 0)),                 # blockdiag Im(F_W)
            pl.BlockSpec((CW, W), lambda b: (0, 0)),                  # coil-reduce matrix
        ],
        out_specs=pl.BlockSpec((1, 2, H, W), lambda b: (b, 0, 0, 0)),
    )

    out = pl.pallas_call(
        _ata_kernel,
        out_shape=jax.ShapeDtypeStruct((B, 2, H, W), jnp.float32),
        grid_spec=grid_spec,
        compiler_params=pltpu.CompilerParams(
            dimension_semantics=("parallel",)),
    )(x_slab, csm_r_slab, csm_i_slab, mask_slab,
      fh_fwd, fh_inv, bd_wr, bd_wi, red)

    return out


def _reference(xk, csm_r, csm_i, mask):
    x = xk[:, 0] + 1j * xk[:, 1]                       # (B,H,W) complex
    csm = csm_r + 1j * csm_i                           # (B,C,H,W)
    coil = x[:, None, :, :] * csm                      # expand_operator
    k = jnp.fft.fft2(coil, norm="ortho")               # fft2, shift=False
    k = k * mask                                       # undersampling
    y = jnp.fft.ifft2(k, norm="ortho")                 # ifft2, shift=False
    out = jnp.sum(y * jnp.conj(csm), axis=1)           # reduce_operator
    return jnp.stack([out.real, out.imag], axis=1).astype(jnp.float32)


if __name__ == "__main__":
    B, C, H, W = 2, 4, 16, 16

    key = jax.random.PRNGKey(0)
    k_x, k_sr, k_si, k_m = jax.random.split(key, 4)

    xk = jax.random.normal(k_x, (B, 2, H, W), dtype=jnp.float32)
    csm_r = jax.random.normal(k_sr, (B, C, H, W), dtype=jnp.float32) * 0.5
    csm_i = jax.random.normal(k_si, (B, C, H, W), dtype=jnp.float32) * 0.5
    mask = jax.random.bernoulli(k_m, p=0.4, shape=(H, W)).astype(jnp.float32)

    out = my_ata(xk, csm_r, csm_i, mask)
    out = jax.block_until_ready(out)

    ref = _reference(xk, csm_r, csm_i, mask)
    assert out.shape == (B, 2, H, W)
    assert jnp.allclose(out, ref, atol=1e-4, rtol=1e-4), (
        float(jnp.max(jnp.abs(out - ref))))

    print("KERNEL_OK")
</pallas_src>

<mosaic_0001>
module attributes {stable_mosaic.version = 11 : i64} {
  func.func @_ata_kernel(%arg0: i32, %arg1: memref<1x2x16x64xf32, #tpu.memory_space<vmem>>, %arg2: memref<1x16x64xf32, #tpu.memory_space<vmem>>, %arg3: memref<1x16x64xf32, #tpu.memory_space<vmem>>, %arg4: memref<16x64xf32, #tpu.memory_space<vmem>>, %arg5: memref<32x32xf32, #tpu.memory_space<vmem>>, %arg6: memref<32x32xf32, #tpu.memory_space<vmem>>, %arg7: memref<64x64xf32, #tpu.memory_space<vmem>>, %arg8: memref<64x64xf32, #tpu.memory_space<vmem>>, %arg9: memref<64x16xf32, #tpu.memory_space<vmem>>, %arg10: memref<1x2x16x16xf32, #tpu.memory_space<vmem>>) attributes {dimension_semantics = [#tpu.dimension_semantics<parallel>], iteration_bounds = array<i64: 2>, scalar_prefetch = 0 : i64, scratch_operands = 0 : i64, tpu.core_type = #tpu.core_type<tc>, window_params = [{transform_indices = @transform_0, window_bounds = array<i64: 1, 2, 16, 64>}, {transform_indices = @transform_1, window_bounds = array<i64: 1, 16, 64>}, {transform_indices = @transform_2, window_bounds = array<i64: 1, 16, 64>}, {pipeline_mode = #tpu.pipeline_mode<synchronous>, transform_indices = @transform_3, window_bounds = array<i64: 16, 64>}, {pipeline_mode = #tpu.pipeline_mode<synchronous>, transform_indices = @transform_4, window_bounds = array<i64: 32, 32>}, {pipeline_mode = #tpu.pipeline_mode<synchronous>, transform_indices = @transform_5, window_bounds = array<i64: 32, 32>}, {pipeline_mode = #tpu.pipeline_mode<synchronous>, transform_indices = @transform_6, window_bounds = array<i64: 64, 64>}, {pipeline_mode = #tpu.pipeline_mode<synchronous>, transform_indices = @transform_7, window_bounds = array<i64: 64, 64>}, {pipeline_mode = #tpu.pipeline_mode<synchronous>, transform_indices = @transform_8, window_bounds = array<i64: 64, 16>}, {transform_indices = @transform_9, window_bounds = array<i64: 1, 2, 16, 16>}]} {
    %c0 = arith.constant 0 : index
    %c0_0 = arith.constant 0 : index
    %c0_1 = arith.constant 0 : index
    %c0_2 = arith.constant 0 : index
    %0 = vector.load %arg1[%c0, %c0_0, %c0_1, %c0_2] : memref<1x2x16x64xf32, #tpu.memory_space<vmem>>, vector<1x1x16x64xf32>
    %1 = vector.shape_cast %0 : vector<1x1x16x64xf32> to vector<16x64xf32>
    %c0_3 = arith.constant 0 : index
    %c1 = arith.constant 1 : index
    %c0_4 = arith.constant 0 : index
    %c0_5 = arith.constant 0 : index
    %2 = vector.load %arg1[%c0_3, %c1, %c0_4, %c0_5] : memref<1x2x16x64xf32, #tpu.memory_space<vmem>>, vector<1x1x16x64xf32>
    %3 = vector.shape_cast %2 : vector<1x1x16x64xf32> to vector<16x64xf32>
    %c0_6 = arith.constant 0 : index
    %c0_7 = arith.constant 0 : index
    %c0_8 = arith.constant 0 : index
    %4 = vector.load %arg2[%c0_6, %c0_7, %c0_8] : memref<1x16x64xf32, #tpu.memory_space<vmem>>, vector<1x16x64xf32>
    %5 = vector.shape_cast %4 : vector<1x16x64xf32> to vector<16x64xf32>
    %c0_9 = arith.constant 0 : index
    %c0_10 = arith.constant 0 : index
    %c0_11 = arith.constant 0 : index
    %6 = vector.load %arg3[%c0_9, %c0_10, %c0_11] : memref<1x16x64xf32, #tpu.memory_space<vmem>>, vector<1x16x64xf32>
    %7 = vector.shape_cast %6 : vector<1x16x64xf32> to vector<16x64xf32>
    %c0_12 = arith.constant 0 : index
    %c0_13 = arith.constant 0 : index
    %8 = vector.load %arg4[%c0_12, %c0_13] : memref<16x64xf32, #tpu.memory_space<vmem>>, vector<16x64xf32>
    %c0_14 = arith.constant 0 : index
    %c0_15 = arith.constant 0 : index
    %9 = vector.load %arg5[%c0_14, %c0_15] : memref<32x32xf32, #tpu.memory_space<vmem>>, vector<32x32xf32>
    %c0_16 = arith.constant 0 : index
    %c0_17 = arith.constant 0 : index
    %10 = vector.load %arg6[%c0_16, %c0_17] : memref<32x32xf32, #tpu.memory_space<vmem>>, vector<32x32xf32>
    %c0_18 = arith.constant 0 : index
    %c0_19 = arith.constant 0 : index
    %11 = vector.load %arg7[%c0_18, %c0_19] : memref<64x64xf32, #tpu.memory_space<vmem>>, vector<64x64xf32>
    %c0_20 = arith.constant 0 : index
    %c0_21 = arith.constant 0 : index
    %12 = vector.load %arg8[%c0_20, %c0_21] : memref<64x64xf32, #tpu.memory_space<vmem>>, vector<64x64xf32>
    %c0_22 = arith.constant 0 : index
    %c0_23 = arith.constant 0 : index
    %13 = vector.load %arg9[%c0_22, %c0_23] : memref<64x16xf32, #tpu.memory_space<vmem>>, vector<64x16xf32>
    %14 = arith.mulf %1, %5 : vector<16x64xf32>
    %15 = arith.mulf %3, %7 : vector<16x64xf32>
    %16 = arith.subf %14, %15 : vector<16x64xf32>
    %17 = arith.mulf %1, %7 : vector<16x64xf32>
    %18 = arith.mulf %3, %5 : vector<16x64xf32>
    %19 = arith.addf %17, %18 : vector<16x64xf32>
    %20 = tpu.concatenate %16, %19 in 0 : vector<16x64xf32>, vector<16x64xf32> -> vector<32x64xf32>
    %cst = arith.constant dense<0.000000e+00> : vector<32x64xf32>
    %21 = tpu.matmul %9, %20, %cst {dimension_numbers = #tpu.dot_dimension_numbers<[1], [0], [0], [1], [0, 0, 1, 1], [], []>} : vector<32x32xf32>, vector<32x64xf32>, vector<32x64xf32> -> vector<32x64xf32>
    %cst_24 = arith.constant dense<0.000000e+00> : vector<32x64xf32>
    %22 = tpu.matmul %21, %11, %cst_24 {dimension_numbers = #tpu.dot_dimension_numbers<[1], [0], [0], [1], [0, 0, 1, 1], [], []>} : vector<32x64xf32>, vector<64x64xf32>, vector<32x64xf32> -> vector<32x64xf32>
    %cst_25 = arith.constant dense<0.000000e+00> : vector<32x64xf32>
    %23 = tpu.matmul %21, %12, %cst_25 {dimension_numbers = #tpu.dot_dimension_numbers<[1], [0], [0], [1], [0, 0, 1, 1], [], []>} : vector<32x64xf32>, vector<64x64xf32>, vector<32x64xf32> -> vector<32x64xf32>
    %24 = vector.extract_strided_slice %22 {offsets = [0, 0], sizes = [16, 64], strides = [1, 1]} : vector<32x64xf32> to vector<16x64xf32>
    %25 = vector.extract_strided_slice %23 {offsets = [16, 0], sizes = [16, 64], strides = [1, 1]} : vector<32x64xf32> to vector<16x64xf32>
    %26 = arith.subf %24, %25 : vector<16x64xf32>
    %27 = vector.extract_strided_slice %23 {offsets = [0, 0], sizes = [16, 64], strides = [1, 1]} : vector<32x64xf32> to vector<16x64xf32>
    %28 = vector.extract_strided_slice %22 {offsets = [16, 0], sizes = [16, 64], strides = [1, 1]} : vector<32x64xf32> to vector<16x64xf32>
    %29 = arith.addf %27, %28 : vector<16x64xf32>
    %30 = arith.mulf %26, %8 : vector<16x64xf32>
    %31 = arith.mulf %29, %8 : vector<16x64xf32>
    %32 = tpu.concatenate %30, %31 in 0 : vector<16x64xf32>, vector<16x64xf32> -> vector<32x64xf32>
    %cst_26 = arith.constant dense<0.000000e+00> : vector<32x64xf32>
    %33 = tpu.matmul %32, %11, %cst_26 {dimension_numbers = #tpu.dot_dimension_numbers<[1], [0], [0], [1], [0, 0, 1, 1], [], []>} : vector<32x64xf32>, vector<64x64xf32>, vector<32x64xf32> -> vector<32x64xf32>
    %cst_27 = arith.constant dense<0.000000e+00> : vector<32x64xf32>
    %34 = tpu.matmul %32, %12, %cst_27 {dimension_numbers = #tpu.dot_dimension_numbers<[1], [0], [0], [1], [0, 0, 1, 1], [], []>} : vector<32x64xf32>, vector<64x64xf32>, vector<32x64xf32> -> vector<32x64xf32>
    %35 = vector.extract_strided_slice %33 {offsets = [0, 0], sizes = [16, 64], strides = [1, 1]} : vector<32x64xf32> to vector<16x64xf32>
    %36 = vector.extract_strided_slice %34 {offsets = [16, 0], sizes = [16, 64], strides = [1, 1]} : vector<32x64xf32> to vector<16x64xf32>
    %37 = arith.addf %35, %36 : vector<16x64xf32>
    %38 = vector.extract_strided_slice %33 {offsets = [16, 0], sizes = [16, 64], strides = [1, 1]} : vector<32x64xf32> to vector<16x64xf32>
    %39 = vector.extract_strided_slice %34 {offsets = [0, 0], sizes = [16, 64], strides = [1, 1]} : vector<32x64xf32> to vector<16x64xf32>
    %40 = arith.subf %38, %39 : vector<16x64xf32>
    %41 = tpu.concatenate %37, %40 in 0 : vector<16x64xf32>, vector<16x64xf32> -> vector<32x64xf32>
    %cst_28 = arith.constant dense<0.000000e+00> : vector<32x64xf32>
    %42 = tpu.matmul %10, %41, %cst_28 {dimension_numbers = #tpu.dot_dimension_numbers<[1], [0], [0], [1], [0, 0, 1, 1], [], []>} : vector<32x32xf32>, vector<32x64xf32>, vector<32x64xf32> -> vector<32x64xf32>
    %43 = vector.extract_strided_slice %42 {offsets = [0, 0], sizes = [16, 64], strides = [1, 1]} : vector<32x64xf32> to vector<16x64xf32>
    %44 = vector.extract_strided_slice %42 {offsets = [16, 0], sizes = [16, 64], strides = [1, 1]} : vector<32x64xf32> to vector<16x64xf32>
    %45 = arith.mulf %43, %5 : vector<16x64xf32>
    %46 = arith.mulf %44, %7 : vector<16x64xf32>
    %47 = arith.addf %45, %46 : vector<16x64xf32>
    %48 = arith.mulf %44, %5 : vector<16x64xf32>
    %49 = arith.mulf %43, %7 : vector<16x64xf32>
    %50 = arith.subf %48, %49 : vector<16x64xf32>
    %51 = tpu.concatenate %47, %50 in 0 : vector<16x64xf32>, vector<16x64xf32> -> vector<32x64xf32>
    %cst_29 = arith.constant dense<0.000000e+00> : vector<32x16xf32>
    %52 = tpu.matmul %51, %13, %cst_29 {dimension_numbers = #tpu.dot_dimension_numbers<[1], [0], [0], [1], [0, 0, 1, 1], [], []>} : vector<32x64xf32>, vector<64x16xf32>, vector<32x16xf32> -> vector<32x16xf32>
    %53 = vector.extract_strided_slice %52 {offsets = [0, 0], sizes = [16, 16], strides = [1, 1]} : vector<32x16xf32> to vector<16x16xf32>
    %c0_30 = arith.constant 0 : index
    %c0_31 = arith.constant 0 : index
    %c0_32 = arith.constant 0 : index
    %c0_33 = arith.constant 0 : index
    %54 = vector.load %arg10[%c0_30, %c0_31, %c0_32, %c0_33] : memref<1x2x16x16xf32, #tpu.memory_space<vmem>>, vector<1x1x16x16xf32>
    %55 = vector.shape_cast %54 : vector<1x1x16x16xf32> to vector<16x16xf32>
    %56 = vector.shape_cast %53 : vector<16x16xf32> to vector<1x1x16x16xf32>
    tpu.vector_store %arg10[%c0_30, %c0_31, %c0_32, %c0_33], %56 {strides = array<i32>} : memref<1x2x16x16xf32, #tpu.memory_space<vmem>>, vector<1x1x16x16xf32>,
    %57 = vector.extract_strided_slice %52 {offsets = [16, 0], sizes = [16, 16], strides = [1, 1]} : vector<32x16xf32> to vector<16x16xf32>
    %c0_34 = arith.constant 0 : index
    %c1_35 = arith.constant 1 : index
    %c0_36 = arith.constant 0 : index
    %c0_37 = arith.constant 0 : index
    %58 = vector.load %arg10[%c0_34, %c1_35, %c0_36, %c0_37] : memref<1x2x16x16xf32, #tpu.memory_space<vmem>>, vector<1x1x16x16xf32>
    %59 = vector.shape_cast %58 : vector<1x1x16x16xf32> to vector<16x16xf32>
    %60 = vector.shape_cast %57 : vector<16x16xf32> to vector<1x1x16x16xf32>
    tpu.vector_store %arg10[%c0_34, %c1_35, %c0_36, %c0_37], %60 {strides = array<i32>} : memref<1x2x16x16xf32, #tpu.memory_space<vmem>>, vector<1x1x16x16xf32>,
    return
  }
  func.func @transform_0(%arg0: i32) -> (i32, i32, i32, i32) {
    %c0_i32 = arith.constant 0 : i32
    %c0_i32_0 = arith.constant 0 : i32
    %c0_i32_1 = arith.constant 0 : i32
    %c0_i32_2 = arith.constant 0 : i32
    return %arg0, %c0_i32, %c0_i32_0, %c0_i32_1 : i32, i32, i32, i32
  }
  func.func @transform_1(%arg0: i32) -> (i32, i32, i32) {
    %c0_i32 = arith.constant 0 : i32
    %c0_i32_0 = arith.constant 0 : i32
    %c0_i32_1 = arith.constant 0 : i32
    return %arg0, %c0_i32, %c0_i32_0 : i32, i32, i32
  }
  func.func @transform_2(%arg0: i32) -> (i32, i32, i32) {
    %c0_i32 = arith.constant 0 : i32
    %c0_i32_0 = arith.constant 0 : i32
    %c0_i32_1 = arith.constant 0 : i32
    return %arg0, %c0_i32, %c0_i32_0 : i32, i32, i32
  }
  func.func @transform_3(%arg0: i32) -> (i32, i32) {
    %c0_i32 = arith.constant 0 : i32
    %c0_i32_0 = arith.constant 0 : i32
    %c0_i32_1 = arith.constant 0 : i32
    return %c0_i32, %c0_i32_0 : i32, i32
  }
  func.func @transform_4(%arg0: i32) -> (i32, i32) {
    %c0_i32 = arith.constant 0 : i32
    %c0_i32_0 = arith.constant 0 : i32
    %c0_i32_1 = arith.constant 0 : i32
    return %c0_i32, %c0_i32_0 : i32, i32
  }
  func.func @transform_5(%arg0: i32) -> (i32, i32) {
    %c0_i32 = arith.constant 0 : i32
    %c0_i32_0 = arith.constant 0 : i32
    %c0_i32_1 = arith.constant 0 : i32
    return %c0_i32, %c0_i32_0 : i32, i32
  }
  func.func @transform_6(%arg0: i32) -> (i32, i32) {
    %c0_i32 = arith.constant 0 : i32
    %c0_i32_0 = arith.constant 0 : i32
    %c0_i32_1 = arith.constant 0 : i32
    return %c0_i32, %c0_i32_0 : i32, i32
  }
  func.func @transform_7(%arg0: i32) -> (i32, i32) {
    %c0_i32 = arith.constant 0 : i32
    %c0_i32_0 = arith.constant 0 : i32
    %c0_i32_1 = arith.constant 0 : i32
    return %c0_i32, %c0_i32_0 : i32, i32
  }
  func.func @transform_8(%arg0: i32) -> (i32, i32) {
    %c0_i32 = arith.constant 0 : i32
    %c0_i32_0 = arith.constant 0 : i32
    %c0_i32_1 = arith.constant 0 : i32
    return %c0_i32, %c0_i32_0 : i32, i32
  }
  func.func @transform_9(%arg0: i32) -> (i32, i32, i32, i32) {
    %c0_i32 = arith.constant 0 : i32
    %c0_i32_0 = arith.constant 0 : i32
    %c0_i32_1 = arith.constant 0 : i32
    %c0_i32_2 = arith.constant 0 : i32
    return %arg0, %c0_i32, %c0_i32_0, %c0_i32_1 : i32, i32, i32, i32
  }
}

</mosaic_0001>

<bundles_post_ra>
// kernel: tile.14
= control target key start
LH: loop header
LB: loop body
LE: loop exit
PB: predicated region body
PF: predicated region fallthrough
CT: control target
= control target key end

     0   :  { %vm322_vm0 = vcmask 1047556   ;;  %s806_s10 = smov 48   ;;  %vm324_vm1 = vcmask 130048   ;;  %s808_s28 = smov 16   ;;  %vm397_vm2 = vcmask 523648   ;;  %vm484_vm3 = vcmask 392448   ;;  %s1195_s0 = inlined_call_operand.vmem [shape: f32[2,2,16,4,16], index: 0, kind: input, shape index: {}]   ;;  %s1196_s1 = inlined_call_operand.vmem [shape: f32[2,2,16,64], index: 1, kind: output, shape index: {}]  }
   0x1   :  { %v768_v0 = vld [vmem:[%s1195_s0 + $0x1c] sm:$0xf]  ;;  %v769_v1 = vld [vmem:[%s1195_s0 + $0x18] sm:$0xf]  ;;  %v770_v2 = vld [vmem:[%s1195_s0 + $0x14] sm:$0xf] }
   0x2   :  { %288 = vst [vmem:[#allocation0 + $0x38] sm:$0xf] %v768_v0  ;;  %293 = vst [vmem:[#allocation0 + $0x30] sm:$0xf] %v769_v1  ;;  %v771_v3 = vld [vmem:[%s1195_s0 + $0x10] sm:$0xf] }
   0x3   :  { %298 = vst [vmem:[#allocation0 + $0x28] sm:$0xf] %v770_v2  ;;  %v772_v4 = vld [vmem:[%s1195_s0 + $0xc] sm:$0xf]  ;;  %v773_v5 = vld [vmem:[%s1195_s0 + $0x8] sm:$0xf] }
   0x4   :  { %303 = vst [vmem:[#allocation0 + $0x20] sm:$0xf] %v771_v3  ;;  %308 = vst [vmem:[#allocation0 + $0x18] sm:$0xf] %v772_v4  ;;  %v774_v6 = vld [vmem:[%s1195_s0 + $0x4] sm:$0xf] }
   0x5   :  { %313 = vst [vmem:[#allocation0 + $0x10] sm:$0xf] %v773_v5  ;;  %v318_v7 = vld [vmem:[%s1195_s0] sm:$0xf]  ;;  %317 = vst [vmem:[#allocation0 + $0x8] sm:$0xf] %v774_v6 }
   0x6   :  { %319 = vst [vmem:[#allocation0] sm:$0xf] %v318_v7  ;;  %v760_v8 = vld [vmem:[%s1195_s0 + $0x3c] sm:$0xf]  ;;  %v761_v9 = vld [vmem:[%s1195_s0 + $0x38] sm:$0xf] }
   0x7   :  { %v762_v10 = vld [vmem:[%s1195_s0 + $0x34] sm:$0xf]  ;;  %248 = vst [vmem:[#allocation0 + $0x78] sm:$0xf] %v760_v8  ;;  %253 = vst [vmem:[#allocation0 + $0x70] sm:$0xf] %v761_v9 }
   0x8   :  { %258 = vst [vmem:[#allocation0 + $0x68] sm:$0xf] %v762_v10  ;;  %v763_v11 = vld [vmem:[%s1195_s0 + $0x30] sm:$0xf]  ;;  %v764_v12 = vld [vmem:[%s1195_s0 + $0x2c] sm:$0xf] }
   0x9   :  { %v765_v13 = vld [vmem:[%s1195_s0 + $0x28] sm:$0xf]  ;;  %263 = vst [vmem:[#allocation0 + $0x60] sm:$0xf] %v763_v11  ;;  %268 = vst [vmem:[#allocation0 + $0x58] sm:$0xf] %v764_v12 }
   0xa   :  { %273 = vst [vmem:[#allocation0 + $0x50] sm:$0xf] %v765_v13  ;;  %v766_v14 = vld [vmem:[%s1195_s0 + $0x24] sm:$0xf]  ;;  %v767_v15 = vld [vmem:[%s1195_s0 + $0x20] sm:$0xf] }
   0xb   :  { %v736_v16 = vld [vmem:[%s1195_s0 + $0x9c] sm:$0xf]  ;;  %278 = vst [vmem:[#allocation0 + $0x48] sm:$0xf] %v766_v14  ;;  %283 = vst [vmem:[#allocation0 + $0x40] sm:$0xf] %v767_v15 }
   0xc   :  { %128 = vst [vmem:[#allocation0 + $0x138] sm:$0xf] %v736_v16  ;;  %v737_v17 = vld [vmem:[%s1195_s0 + $0x98] sm:$0xf]  ;;  %v738_v18 = vld [vmem:[%s1195_s0 + $0x94] sm:$0xf] }
   0xd   :  { %v739_v19 = vld [vmem:[%s1195_s0 + $0x90] sm:$0xf]  ;;  %133 = vst [vmem:[#allocation0 + $0x130] sm:$0xf] %v737_v17  ;;  %138 = vst [vmem:[#allocation0 + $0x128] sm:$0xf] %v738_v18 }
   0xe   :  { %143 = vst [vmem:[#allocation0 + $0x120] sm:$0xf] %v739_v19  ;;  %v740_v20 = vld [vmem:[%s1195_s0 + $0x8c] sm:$0xf]  ;;  %v741_v21 = vld [vmem:[%s1195_s0 + $0x88] sm:$0xf] }
   0xf   :  { %v742_v22 = vld [vmem:[%s1195_s0 + $0x84] sm:$0xf]  ;;  %148 = vst [vmem:[#allocation0 + $0x118] sm:$0xf] %v740_v20  ;;  %153 = vst [vmem:[#allocation0 + $0x110] sm:$0xf] %v741_v21 }
  0x10   :  { %158 = vst [vmem:[#allocation0 + $0x108] sm:$0xf] %v742_v22  ;;  %v743_v23 = vld [vmem:[%s1195_s0 + $0x80] sm:$0xf]  ;;  %v728_v24 = vld [vmem:[%s1195_s0 + $0xbc] sm:$0xf] }
  0x11   :  { %v729_v25 = vld [vmem:[%s1195_s0 + $0xb8] sm:$0xf]  ;;  %163 = vst [vmem:[#allocation0 + $0x100] sm:$0xf] %v743_v23  ;;  %88 = vst [vmem:[#allocation0 + $0x178] sm:$0xf] %v728_v24 }
  0x12   :  { %v392_v26 = vld [vmem:[#allocation0 + $0x3] ss:$8 sm:$0xf0]   ;;  %93 = vst [vmem:[#allocation0 + $0x170] sm:$0xf] %v729_v25  ;;  %vm571_vm4 = vcmask 261248  }
  0x13   :  { %v730_v27 = vld [vmem:[%s1195_s0 + $0xb4] sm:$0xf]  ;;  %v390_v28 = vld [vmem:[#allocation0 + $0x3] ss:$8 sm:$0xf]  }
  0x14   :  { %98 = vst [vmem:[#allocation0 + $0x168] sm:$0xf] %v730_v27  ;;  %v731_v29 = vld [vmem:[%s1195_s0 + $0xb0] sm:$0xf]  ;;  %v394_v30 = vsel %vm322_vm0, %v392_v26, %v390_v28  ;;  %v732_v31 = vld [vmem:[%s1195_s0 + $0xac] sm:$0xf] }
  0x15   :  { %103 = vst [vmem:[#allocation0 + $0x160] sm:$0xf] %v731_v29  ;;  %v733_v32 = vld [vmem:[%s1195_s0 + $0xa8] sm:$0xf]  ;;  %v734_v33 = vld [vmem:[%s1195_s0 + $0xa4] sm:$0xf]  ;;  %395 = vrot.lane.b32.xlu0 %v394_v30, %s806_s10 }
  0x16   :  { %v413_v34 = vld [vmem:[#allocation0 + $0x43] ss:$8 sm:$0xf0]   ;;  %108 = vst [vmem:[#allocation0 + $0x158] sm:$0xf] %v732_v31 }
  0x17   :  { %113 = vst [vmem:[#allocation0 + $0x150] sm:$0xf] %v733_v32  ;;  %118 = vst [vmem:[#allocation0 + $0x148] sm:$0xf] %v734_v33  ;;  %v735_v35 = vld [vmem:[%s1195_s0 + $0xa0] sm:$0xf] }
  0x18   :  { %v411_v36 = vld [vmem:[#allocation0 + $0x43] ss:$8 sm:$0xf]   ;;  %123 = vst [vmem:[#allocation0 + $0x140] sm:$0xf] %v735_v35 }
  0x19   :  { %v752_v37 = vld [vmem:[%s1195_s0 + $0x5c] sm:$0xf]  ;;  %v415_v38 = vsel %vm322_vm0, %v413_v34, %v411_v36  ;;  %v402_v39 = vld [vmem:[#allocation0 + $0x103] ss:$8 sm:$0xf0]  }
  0x1a   :  { %208 = vst [vmem:[#allocation0 + $0xb8] sm:$0xf] %v752_v37  ;;  %v753_v40 = vld [vmem:[%s1195_s0 + $0x58] sm:$0xf]  ;;  %416 = vrot.lane.b32.xlu1 %v415_v38, %s806_s10  ;;  %v754_v41 = vld [vmem:[%s1195_s0 + $0x54] sm:$0xf] }
  0x1b   :  { %213 = vst [vmem:[#allocation0 + $0xb0] sm:$0xf] %v753_v40  ;;  %v755_v42 = vld [vmem:[%s1195_s0 + $0x50] sm:$0xf]  ;;  %v756_v43 = vld [vmem:[%s1195_s0 + $0x4c] sm:$0xf] }
  0x1c   :  { %v400_v44 = vld [vmem:[#allocation0 + $0x103] ss:$8 sm:$0xf]   ;;  %218 = vst [vmem:[#allocation0 + $0xa8] sm:$0xf] %v754_v41 }
  0x1d   :  { %223 = vst [vmem:[#allocation0 + $0xa0] sm:$0xf] %v755_v42  ;;  %228 = vst [vmem:[#allocation0 + $0x98] sm:$0xf] %v756_v43  ;;  %v757_v45 = vld [vmem:[%s1195_s0 + $0x48] sm:$0xf]  ;;  %v404_v46 = vsel %vm322_vm0, %v402_v39, %v400_v44 }
  0x1e   :  { %233 = vst [vmem:[#allocation0 + $0x90] sm:$0xf] %v757_v45  ;;  %v758_v47 = vld [vmem:[%s1195_s0 + $0x44] sm:$0xf]  ;;  %v759_v48 = vld [vmem:[%s1195_s0 + $0x40] sm:$0xf]  ;;  %405 = vrot.lane.b32.xlu0 %v404_v46, %s806_s10 }
  0x1f   :  { %v720_v49 = vld [vmem:[%s1195_s0 + $0xdc] sm:$0xf]  ;;  %v424_v50 = vld [vmem:[#allocation0 + $0x143] ss:$8 sm:$0xf0]  }
  0x20   :  { %238 = vst [vmem:[#allocation0 + $0x88] sm:$0xf] %v758_v47  ;;  %243 = vst [vmem:[#allocation0 + $0x80] sm:$0xf] %v759_v48  ;;  %v721_v51 = vld [vmem:[%s1195_s0 + $0xd8] sm:$0xf] }
  0x21   :  { %48 = vst [vmem:[#allocation0 + $0x1b8] sm:$0xf] %v720_v49  ;;  %53 = vst [vmem:[#allocation0 + $0x1b0] sm:$0xf] %v721_v51  ;;  %v722_v52 = vld [vmem:[%s1195_s0 + $0xd4] sm:$0xf] }
  0x22   :  { %v723_v53 = vld [vmem:[%s1195_s0 + $0xd0] sm:$0xf]  ;;  %v724_v54 = vld [vmem:[%s1195_s0 + $0xcc] sm:$0xf]  ;;  %58 = vst [vmem:[#allocation0 + $0x1a8] sm:$0xf] %v722_v52 }
  0x23   :  { %v422_v55 = vld [vmem:[#allocation0 + $0x143] ss:$8 sm:$0xf]   ;;  %63 = vst [vmem:[#allocation0 + $0x1a0] sm:$0xf] %v723_v53 }
  0x24   :  { %68 = vst [vmem:[#allocation0 + $0x198] sm:$0xf] %v724_v54  ;;  %v725_v56 = vld [vmem:[%s1195_s0 + $0xc8] sm:$0xf]  ;;  %v426_v57 = vsel %vm322_vm0, %v424_v50, %v422_v55  ;;  %v726_v58 = vld [vmem:[%s1195_s0 + $0xc4] sm:$0xf] }
  0x25   :  { %73 = vst [vmem:[#allocation0 + $0x190] sm:$0xf] %v725_v56  ;;  %v727_v59 = vld [vmem:[%s1195_s0 + $0xc0] sm:$0xf]  ;;  %v744_v60 = vld [vmem:[%s1195_s0 + $0x7c] sm:$0xf]  ;;  %427 = vrot.lane.b32.xlu1 %v426_v57, %s806_s10 }
  0x26   :  { %78 = vst [vmem:[#allocation0 + $0x188] sm:$0xf] %v726_v58  ;;  %83 = vst [vmem:[#allocation0 + $0x180] sm:$0xf] %v727_v59  ;;  %v745_v61 = vld [vmem:[%s1195_s0 + $0x78] sm:$0xf] }
  0x27   :  { %168 = vst [vmem:[#allocation0 + $0xf8] sm:$0xf] %v744_v60  ;;  %v746_v62 = vld [vmem:[%s1195_s0 + $0x74] sm:$0xf]  ;;  %v747_v63 = vld [vmem:[%s1195_s0 + $0x70] sm:$0xf] }
  0x28   :  { %v435_v0 = vld [vmem:[#allocation0 + $0x83] ss:$8 sm:$0xf0]   ;;  %173 = vst [vmem:[#allocation0 + $0xf0] sm:$0xf] %v745_v61 }
  0x29   :  { %178 = vst [vmem:[#allocation0 + $0xe8] sm:$0xf] %v746_v62  ;;  %183 = vst [vmem:[#allocation0 + $0xe0] sm:$0xf] %v747_v63  ;;  %v748_v1 = vld [vmem:[%s1195_s0 + $0x6c] sm:$0xf] }
  0x2a   :  { %188 = vst [vmem:[#allocation0 + $0xd8] sm:$0xf] %v748_v1  ;;  %v749_v2 = vld [vmem:[%s1195_s0 + $0x68] sm:$0xf]  ;;  %v750_v3 = vld [vmem:[%s1195_s0 + $0x64] sm:$0xf] }
  0x2b   :  { %v751_v4 = vld [vmem:[%s1195_s0 + $0x60] sm:$0xf]  ;;  %193 = vst [vmem:[#allocation0 + $0xd0] sm:$0xf] %v749_v2  ;;  %198 = vst [vmem:[#allocation0 + $0xc8] sm:$0xf] %v750_v3 }
  0x2c   :  { %v433_v5 = vld [vmem:[#allocation0 + $0x83] ss:$8 sm:$0xf]   ;;  %203 = vst [vmem:[#allocation0 + $0xc0] sm:$0xf] %v751_v4 }
  0x2d   :  { %v712_v6 = vld [vmem:[%s1195_s0 + $0xfc] sm:$0xf]  ;;  %v437_v7 = vsel %vm322_vm0, %v435_v0, %v433_v5  ;;  %v713_v8 = vld [vmem:[%s1195_s0 + $0xf8] sm:$0xf]  ;;  %v714_v9 = vld [vmem:[%s1195_s0 + $0xf4] sm:$0xf] }
  0x2e   :  { %8 = vst [vmem:[#allocation0 + $0x1f8] sm:$0xf] %v712_v6  ;;  %v715_v10 = vld [vmem:[%s1195_s0 + $0xf0] sm:$0xf]  ;;  %438 = vrot.lane.b32.xlu0 %v437_v7, %s806_s10  ;;  %13 = vst [vmem:[#allocation0 + $0x1f0] sm:$0xf] %v713_v8 }
  0x2f   :  { %v446_v11 = vld [vmem:[#allocation0 + $0x183] ss:$8 sm:$0xf0]   ;;  %18 = vst [vmem:[#allocation0 + $0x1e8] sm:$0xf] %v714_v9 }
  0x30   :  { %23 = vst [vmem:[#allocation0 + $0x1e0] sm:$0xf] %v715_v10  ;;  %v716_v12 = vld [vmem:[%s1195_s0 + $0xec] sm:$0xf]  ;;  %v717_v13 = vld [vmem:[%s1195_s0 + $0xe8] sm:$0xf] }
  0x31   :  { %28 = vst [vmem:[#allocation0 + $0x1d8] sm:$0xf] %v716_v12  ;;  %v718_v14 = vld [vmem:[%s1195_s0 + $0xe4] sm:$0xf]  ;;  %v719_v15 = vld [vmem:[%s1195_s0 + $0xe0] sm:$0xf] }
  0x32   :  { %v444_v16 = vld [vmem:[#allocation0 + $0x183] ss:$8 sm:$0xf]   ;;  %33 = vst [vmem:[#allocation0 + $0x1d0] sm:$0xf] %v717_v13  ;;  %s807_s0 = smov 32  }
  0x33   :  { %38 = vst [vmem:[#allocation0 + $0x1c8] sm:$0xf] %v718_v14  ;;  %43 = vst [vmem:[#allocation0 + $0x1c0] sm:$0xf] %v719_v15  ;;  %v448_v17 = vsel %vm322_vm0, %v446_v11, %v444_v16 }
  0x34   :  { %v457_v18 = vld [vmem:[#allocation0 + $0xc3] ss:$8 sm:$0xf0]   ;;  %449 = vrot.lane.b32.xlu1 %v448_v17, %s806_s10  ;;  %v477_v19 = vld [vmem:[#allocation0 + $0x2] ss:$8 sm:$0xf]  }
  0x35   :  { %v455_v20 = vld [vmem:[#allocation0 + $0xc3] ss:$8 sm:$0xf]   ;;  %v479_v21 = vld [vmem:[#allocation0 + $0x2] ss:$8 sm:$0xf0]  }
  0x36   :  { %v459_v22 = vsel %vm322_vm0, %v457_v18, %v455_v20  ;;  %v487_v24 = vld [vmem:[#allocation0 + $0x102] ss:$8 sm:$0xf]   ;;  %v481_v25 = vsel %vm322_vm0, %v479_v21, %v477_v19  ;;  %v564_v45 = vld [vmem:[#allocation0 + $0x1] ss:$8 sm:$0xf]  }
  0x37   :  { %460 = vrot.lane.b32.xlu0 %v459_v22, %s806_s10  ;;  %v468_v23 = vld [vmem:[#allocation0 + $0x1c3] ss:$8 sm:$0xf0]   ;;  %v489_v26 = vld [vmem:[#allocation0 + $0x102] ss:$8 sm:$0xf0]  }
  0x38   :  { %v498_v27 = vld [vmem:[#allocation0 + $0x42] ss:$8 sm:$0xf]   ;;  %v491_v31 = vsel %vm322_vm0, %v489_v26, %v487_v24  ;;  %v566_v48 = vld [vmem:[#allocation0 + $0x1] ss:$8 sm:$0xf0]  }
  0x39   :  { %v500_v29 = vld [vmem:[#allocation0 + $0x42] ss:$8 sm:$0xf0]   ;;  %v320_v49 = vld [vmem:[#allocation0] ss:$8 sm:$0xf]   ;;  %v568_v63 = vsel %vm322_vm0, %v566_v48, %v564_v45 }
  0x3a   :  { %v466_v28 = vld [vmem:[#allocation0 + $0x1c3] ss:$8 sm:$0xf]   ;;  %v502_v32 = vsel %vm322_vm0, %v500_v29, %v498_v27  ;;  %v509_v33 = vld [vmem:[#allocation0 + $0x142] ss:$8 sm:$0xf]  }
  0x3b   :  { %v470_v30 = vsel %vm322_vm0, %v468_v23, %v466_v28  ;;  %482 = vrot.lane.b32.xlu0 %v481_v25, %s807_s0  ;;  %v511_v34 = vld [vmem:[#allocation0 + $0x142] ss:$8 sm:$0xf0]   ;;  %v321_v50 = vld [vmem:[#allocation0] ss:$8 sm:$0xf0]  }
  0x3c   :  { %471 = vrot.lane.b32.xlu1 %v470_v30, %s806_s10  ;;  %v520_v35 = vld [vmem:[#allocation0 + $0x82] ss:$8 sm:$0xf]   ;;  %v513_v37 = vsel %vm322_vm0, %v511_v34, %v509_v33  ;;  %v327_v51 = vld [vmem:[#allocation0 + $0x40] ss:$8 sm:$0xf]   ;;  %v323_v52 = vsel %vm322_vm0, %v321_v50, %v320_v49 }
  0x3d   :  { %v522_v36 = vld [vmem:[#allocation0 + $0x82] ss:$8 sm:$0xf0]   ;;  %v329_v53 = vld [vmem:[#allocation0 + $0x40] ss:$8 sm:$0xf0]  }
  0x3e   :  { %v524_v38 = vsel %vm322_vm0, %v522_v36, %v520_v35  ;;  %v531_v39 = vld [vmem:[#allocation0 + $0x182] ss:$8 sm:$0xf]   ;;  %v354_v54 = vld [vmem:[#allocation0 + $0x100] ss:$8 sm:$0xf]   ;;  %v331_v59 = vsel %vm322_vm0, %v329_v53, %v327_v51 }
  0x3f   :  { %503 = vrot.lane.b32.xlu0 %v502_v32, %s807_s0  ;;  %v533_v40 = vld [vmem:[#allocation0 + $0x182] ss:$8 sm:$0xf0]   ;;  %v574_v55 = vld [vmem:[#allocation0 + $0x101] ss:$8 sm:$0xf]  }
  0x40   :  { %492 = vrot.lane.b32.xlu1 %v491_v31, %s807_s0  ;;  %v542_v41 = vld [vmem:[#allocation0 + $0xc2] ss:$8 sm:$0xf]   ;;  %v535_v46 = vsel %vm322_vm0, %v533_v40, %v531_v39  ;;  %v576_v56 = vld [vmem:[#allocation0 + $0x101] ss:$8 sm:$0xf0]  }
  0x41   :  { %v544_v42 = vld [vmem:[#allocation0 + $0xc2] ss:$8 sm:$0xf0]   ;;  %v585_v57 = vld [vmem:[#allocation0 + $0x41] ss:$8 sm:$0xf]   ;;  %v578_v13 = vsel %vm322_vm0, %v576_v56, %v574_v55 }
  0x42   :  { %v553_v43 = vld [vmem:[#allocation0 + $0x1c2] ss:$8 sm:$0xf]   ;;  %v546_v47 = vsel %vm322_vm0, %v544_v42, %v542_v41  ;;  %v587_v58 = vld [vmem:[#allocation0 + $0x41] ss:$8 sm:$0xf0]  }
  0x43   :  { %525 = vrot.lane.b32.xlu0 %v524_v38, %s807_s0  ;;  %v555_v44 = vld [vmem:[#allocation0 + $0x1c2] ss:$8 sm:$0xf0]   ;;  %325 = vst.msk [vmem:[%s1196_s1] sm:$0xff] %vm324_vm1, %v323_v52   ;;  %775 = vst.msk [vmem:[%s1196_s1 + $0x8] sm:$0xff] %vm324_vm1, %v331_v59   ;;  %v589_v14 = vsel %vm322_vm0, %v587_v58, %v585_v57 }
  0x44   :  { %514 = vrot.lane.b32.xlu1 %v513_v37, %s807_s0  ;;  %v356_v60 = vld [vmem:[#allocation0 + $0x100] ss:$8 sm:$0xf0]   ;;  %v557_v62 = vsel %vm322_vm0, %v555_v44, %v553_v43  ;;  %v596_v9 = vld [vmem:[#allocation0 + $0x141] ss:$8 sm:$0xf]  }
  0x45   :  { %v363_v61 = vld [vmem:[#allocation0 + $0x140] ss:$8 sm:$0xf]   ;;  %v358_v0 = vsel %vm322_vm0, %v356_v60, %v354_v54  ;;  %v598_v15 = vld [vmem:[#allocation0 + $0x141] ss:$8 sm:$0xf0]  }
  0x46   :  { %v365_v1 = vld [vmem:[#allocation0 + $0x140] ss:$8 sm:$0xf0]   ;;  %778 = vst.msk [vmem:[%s1196_s1 + $0x20] sm:$0xff] %vm324_vm1, %v358_v0   ;;  %v600_v21 = vsel %vm322_vm0, %v598_v15, %v596_v9 }
  0x47   :  { %547 = vrot.lane.b32.xlu0 %v546_v47, %s807_s0  ;;  %v336_v2 = vld [vmem:[#allocation0 + $0x80] ss:$8 sm:$0xf]   ;;  %v367_v3 = vsel %vm322_vm0, %v365_v1, %v363_v61  ;;  %v607_v18 = vld [vmem:[#allocation0 + $0x81] ss:$8 sm:$0xf]  }
  0x48   :  { %536 = vrot.lane.b32.xlu1 %v535_v46, %s807_s0  ;;  %v338_v4 = vld [vmem:[#allocation0 + $0x80] ss:$8 sm:$0xf0]   ;;  %779 = vst.msk [vmem:[%s1196_s1 + $0x28] sm:$0xff] %vm324_vm1, %v367_v3  }
  0x49   :  { %v372_v5 = vld [vmem:[#allocation0 + $0x180] ss:$8 sm:$0xf]   ;;  %v340_v6 = vsel %vm322_vm0, %v338_v4, %v336_v2  ;;  %v609_v19 = vld [vmem:[#allocation0 + $0x81] ss:$8 sm:$0xf0]  }
  0x4a   :  { %v374_v7 = vld [vmem:[#allocation0 + $0x180] ss:$8 sm:$0xf0]   ;;  %776 = vst.msk [vmem:[%s1196_s1 + $0x10] sm:$0xff] %vm324_vm1, %v340_v6   ;;  %v611_v22 = vsel %vm322_vm0, %v609_v19, %v607_v18 }
  0x4b   :  { %v345_v8 = vld [vmem:[#allocation0 + $0xc0] ss:$8 sm:$0xf]   ;;  %569 = vrot.lane.b32.xlu0 %v568_v63, %s808_s28  ;;  %v376_v10 = vsel %vm322_vm0, %v374_v7, %v372_v5  ;;  %v618_v23 = vld [vmem:[#allocation0 + $0x181] ss:$8 sm:$0xf]  }
  0x4c   :  { %558 = vrot.lane.b32.xlu1 %v557_v62, %s807_s0  ;;  %v347_v11 = vld [vmem:[#allocation0 + $0xc0] ss:$8 sm:$0xf0]   ;;  %780 = vst.msk [vmem:[%s1196_s1 + $0x30] sm:$0xff] %vm324_vm1, %v376_v10  }
  0x4d   :  { %v381_v12 = vld [vmem:[#allocation0 + $0x1c0] ss:$8 sm:$0xf]   ;;  %v349_v16 = vsel %vm322_vm0, %v347_v11, %v345_v8  ;;  %v620_v24 = vld [vmem:[#allocation0 + $0x181] ss:$8 sm:$0xf0]  }
  0x4e   :  { %v383_v17 = vld [vmem:[#allocation0 + $0x1c0] ss:$8 sm:$0xf0]   ;;  %777 = vst.msk [vmem:[%s1196_s1 + $0x18] sm:$0xff] %vm324_vm1, %v349_v16   ;;  %v622_v27 = vsel %vm322_vm0, %v620_v24, %v618_v23 }
  0x4f   :  { %v385_v20 = vsel %vm322_vm0, %v383_v17, %v381_v12  ;;  %590 = vrot.lane.b32.xlu0 %v589_v14, %s808_s28  ;;  %v629_v25 = vld [vmem:[#allocation0 + $0xc1] ss:$8 sm:$0xf]  }
  0x50   :  { %781 = vst.msk [vmem:[%s1196_s1 + $0x38] sm:$0xff] %vm324_vm1, %v385_v20   ;;  %579 = vrot.lane.b32.xlu1 %v578_v13, %s808_s28  ;;  %v631_v26 = vld [vmem:[#allocation0 + $0xc1] ss:$8 sm:$0xf0]  }
  0x51   :  { %v633_v28 = vsel %vm322_vm0, %v631_v26, %v629_v25  ;;  %v640_v29 = vld [vmem:[#allocation0 + $0x1c1] ss:$8 sm:$0xf]  }
  0x52   :  { %v642_v30 = vld [vmem:[#allocation0 + $0x1c1] ss:$8 sm:$0xf0]  }
  0x53   :  { %612 = vrot.lane.b32.xlu0 %v611_v22, %s808_s28  ;;  %v644_v31 = vsel %vm322_vm0, %v642_v30, %v640_v29 }
  0x54   :  { %601 = vrot.lane.b32.xlu1 %v600_v21, %s808_s28 }
  0x57   :  { %634 = vrot.lane.b32.xlu0 %v633_v28, %s808_s28 }
  0x58   :  { %623 = vrot.lane.b32.xlu1 %v622_v27, %s808_s28 }
  0x5c   :  { %645 = vrot.lane.b32.xlu1 %v644_v31, %s808_s28 }
  0x87   :  { %v396_v32 = vpop.permute.xlu0 %395  }
  0x88   :  { %398 = vst.msk [vmem:[%s1196_s1] sm:$0xff] %vm397_vm2, %v396_v32  }
  0x8c   :  { %v417_v33 = vpop.permute.xlu1 %416  }
  0x8d   :  { %783 = vst.msk [vmem:[%s1196_s1 + $0x8] sm:$0xff] %vm397_vm2, %v417_v33  }
  0x90   :  { %v406_v34 = vpop.permute.xlu0 %405  }
  0x91   :  { %782 = vst.msk [vmem:[%s1196_s1 + $0x20] sm:$0xff] %vm397_vm2, %v406_v34  }
  0x97   :  { %v428_v35 = vpop.permute.xlu1 %427  }
  0x98   :  { %784 = vst.msk [vmem:[%s1196_s1 + $0x28] sm:$0xff] %vm397_vm2, %v428_v35  }
  0xa0   :  { %v439_v36 = vpop.permute.xlu0 %438  }
  0xa1   :  { %785 = vst.msk [vmem:[%s1196_s1 + $0x10] sm:$0xff] %vm397_vm2, %v439_v36  }
  0xa6   :  { %v450_v37 = vpop.permute.xlu1 %449  }
  0xa7   :  { %786 = vst.msk [vmem:[%s1196_s1 + $0x30] sm:$0xff] %vm397_vm2, %v450_v37  }
  0xa9   :  { %v461_v38 = vpop.permute.xlu0 %460  }
  0xaa   :  { %787 = vst.msk [vmem:[%s1196_s1 + $0x18] sm:$0xff] %vm397_vm2, %v461_v38  }
  0xad   :  { %v483_v40 = vpop.permute.xlu0 %482  }
  0xae   :  { %v472_v39 = vpop.permute.xlu1 %471   ;;  %485 = vst.msk [vmem:[%s1196_s1] sm:$0xff] %vm484_vm3, %v483_v40  }
  0xaf   :  { %788 = vst.msk [vmem:[%s1196_s1 + $0x38] sm:$0xff] %vm397_vm2, %v472_v39  }
  0xb1   :  { %v504_v42 = vpop.permute.xlu0 %503  }
  0xb2   :  { %v493_v41 = vpop.permute.xlu1 %492   ;;  %790 = vst.msk [vmem:[%s1196_s1 + $0x8] sm:$0xff] %vm484_vm3, %v504_v42  }
  0xb3   :  { %789 = vst.msk [vmem:[%s1196_s1 + $0x20] sm:$0xff] %vm484_vm3, %v493_v41  }
  0xb5   :  { %v526_v44 = vpop.permute.xlu0 %525  }
  0xb6   :  { %v515_v43 = vpop.permute.xlu1 %514   ;;  %792 = vst.msk [vmem:[%s1196_s1 + $0x10] sm:$0xff] %vm484_vm3, %v526_v44  }
  0xb7   :  { %791 = vst.msk [vmem:[%s1196_s1 + $0x28] sm:$0xff] %vm484_vm3, %v515_v43  }
  0xb9   :  { %v548_v46 = vpop.permute.xlu0 %547  }
  0xba   :  { %v537_v45 = vpop.permute.xlu1 %536   ;;  %794 = vst.msk [vmem:[%s1196_s1 + $0x18] sm:$0xff] %vm484_vm3, %v548_v46  }
  0xbb   :  { %793 = vst.msk [vmem:[%s1196_s1 + $0x30] sm:$0xff] %vm484_vm3, %v537_v45  }
  0xbd   :  { %v570_v48 = vpop.permute.xlu0 %569  }
  0xbe   :  { %v559_v47 = vpop.permute.xlu1 %558   ;;  %572 = vst.msk [vmem:[%s1196_s1] sm:$0xff] %vm571_vm4, %v570_v48  }
  0xbf   :  { %795 = vst.msk [vmem:[%s1196_s1 + $0x38] sm:$0xff] %vm484_vm3, %v559_v47  }
  0xc1   :  { %v591_v50 = vpop.permute.xlu0 %590  }
  0xc2   :  { %v580_v49 = vpop.permute.xlu1 %579   ;;  %797 = vst.msk [vmem:[%s1196_s1 + $0x8] sm:$0xff] %vm571_vm4, %v591_v50  }
  0xc3   :  { %796 = vst.msk [vmem:[%s1196_s1 + $0x20] sm:$0xff] %vm571_vm4, %v580_v49  }
  0xc5   :  { %v613_v52 = vpop.permute.xlu0 %612  }
  0xc6   :  { %v602_v51 = vpop.permute.xlu1 %601   ;;  %799 = vst.msk [vmem:[%s1196_s1 + $0x10] sm:$0xff] %vm571_vm4, %v613_v52  }
  0xc7   :  { %798 = vst.msk [vmem:[%s1196_s1 + $0x28] sm:$0xff] %vm571_vm4, %v602_v51  }
  0xc9   :  { %v635_v54 = vpop.permute.xlu0 %634  }
  0xca   :  { %v624_v53 = vpop.permute.xlu1 %623   ;;  %801 = vst.msk [vmem:[%s1196_s1 + $0x18] sm:$0xff] %vm571_vm4, %v635_v54  }
  0xcb   :  { %800 = vst.msk [vmem:[%s1196_s1 + $0x30] sm:$0xff] %vm571_vm4, %v624_v53  }
  0xce   :  { %v646_v55 = vpop.permute.xlu1 %645  }
  0xcf   :  { %802 = vst.msk [vmem:[%s1196_s1 + $0x38] sm:$0xff] %vm571_vm4, %v646_v55  }

// kernel: tile.19
= control target key start
LH: loop header
LB: loop body
LE: loop exit
PB: predicated region body
PF: predicated region fallthrough
CT: control target
= control target key end

     0   :  { %vm82_vm0 = vcmask 1047556   ;;  %vm84_vm1 = vcmask 130048   ;;  %s195_s9 = smov 48   ;;  %s196_s14 = smov 16   ;;  %vm103_vm2 = vcmask 523648   ;;  %vm124_vm3 = vcmask 392448   ;;  %s289_s0 = inlined_call_operand.vmem [shape: f32[16,4,16], index: 0, kind: input, shape index: {}]   ;;  %s290_s1 = inlined_call_operand.vmem [shape: f32[16,64], index: 1, kind: output, shape index: {}]  }
   0x1   :  { %v180_v0 = vld [vmem:[%s289_s0 + $0x1c] sm:$0xf]  ;;  %v181_v1 = vld [vmem:[%s289_s0 + $0x18] sm:$0xf]  ;;  %v182_v2 = vld [vmem:[%s289_s0 + $0x14] sm:$0xf] }
   0x2   :  { %48 = vst [vmem:[#allocation0 + $0x38] sm:$0xf] %v180_v0  ;;  %53 = vst [vmem:[#allocation0 + $0x30] sm:$0xf] %v181_v1  ;;  %v183_v3 = vld [vmem:[%s289_s0 + $0x10] sm:$0xf] }
   0x3   :  { %58 = vst [vmem:[#allocation0 + $0x28] sm:$0xf] %v182_v2  ;;  %v184_v4 = vld [vmem:[%s289_s0 + $0xc] sm:$0xf]  ;;  %v185_v5 = vld [vmem:[%s289_s0 + $0x8] sm:$0xf] }
   0x4   :  { %63 = vst [vmem:[#allocation0 + $0x20] sm:$0xf] %v183_v3  ;;  %68 = vst [vmem:[#allocation0 + $0x18] sm:$0xf] %v184_v4  ;;  %v186_v6 = vld [vmem:[%s289_s0 + $0x4] sm:$0xf] }
   0x5   :  { %73 = vst [vmem:[#allocation0 + $0x10] sm:$0xf] %v185_v5  ;;  %v78_v7 = vld [vmem:[%s289_s0] sm:$0xf]  ;;  %77 = vst [vmem:[#allocation0 + $0x8] sm:$0xf] %v186_v6 }
   0x6   :  { %79 = vst [vmem:[#allocation0] sm:$0xf] %v78_v7  ;;  %v172_v8 = vld [vmem:[%s289_s0 + $0x3c] sm:$0xf]  ;;  %v173_v9 = vld [vmem:[%s289_s0 + $0x38] sm:$0xf] }
   0x7   :  { %8 = vst [vmem:[#allocation0 + $0x78] sm:$0xf] %v172_v8  ;;  %13 = vst [vmem:[#allocation0 + $0x70] sm:$0xf] %v173_v9  ;;  %v174_v10 = vld [vmem:[%s289_s0 + $0x34] sm:$0xf] }
   0x8   :  { %v175_v11 = vld [vmem:[%s289_s0 + $0x30] sm:$0xf]  ;;  %v176_v12 = vld [vmem:[%s289_s0 + $0x2c] sm:$0xf]  ;;  %18 = vst [vmem:[#allocation0 + $0x68] sm:$0xf] %v174_v10 }
   0x9   :  { %23 = vst [vmem:[#allocation0 + $0x60] sm:$0xf] %v175_v11  ;;  %28 = vst [vmem:[#allocation0 + $0x58] sm:$0xf] %v176_v12  ;;  %v177_v13 = vld [vmem:[%s289_s0 + $0x28] sm:$0xf] }
   0xa   :  { %v178_v14 = vld [vmem:[%s289_s0 + $0x24] sm:$0xf]  ;;  %v179_v15 = vld [vmem:[%s289_s0 + $0x20] sm:$0xf]  ;;  %33 = vst [vmem:[#allocation0 + $0x50] sm:$0xf] %v177_v13 }
   0xb   :  { %38 = vst [vmem:[#allocation0 + $0x48] sm:$0xf] %v178_v14  ;;  %43 = vst [vmem:[#allocation0 + $0x40] sm:$0xf] %v179_v15  ;;  %s194_s0 = smov 32   ;;  %vm145_vm4 = vcmask 261248  }
   0xc   :  { %v119_v16 = vld [vmem:[#allocation0 + $0x2] ss:$8 sm:$0xf0]   ;;  %v98_v17 = vld [vmem:[#allocation0 + $0x3] ss:$8 sm:$0xf0]  }
   0xd   :  { %v117_v18 = vld [vmem:[#allocation0 + $0x2] ss:$8 sm:$0xf]   ;;  %v96_v19 = vld [vmem:[#allocation0 + $0x3] ss:$8 sm:$0xf]  }
   0xe   :  { %v121_v20 = vsel %vm82_vm0, %v119_v16, %v117_v18  ;;  %v100_v21 = vsel %vm82_vm0, %v98_v17, %v96_v19  ;;  %v138_v24 = vld [vmem:[#allocation0 + $0x1] ss:$8 sm:$0xf]   ;;  %v80_v32 = vld [vmem:[#allocation0] ss:$8 sm:$0xf]  }
   0xf   :  { %122 = vrot.lane.b32.xlu1 %v121_v20, %s194_s0  ;;  %101 = vrot.lane.b32.xlu0 %v100_v21, %s195_s9  ;;  %v140_v25 = vld [vmem:[#allocation0 + $0x1] ss:$8 sm:$0xf0]   ;;  %v81_v33 = vld [vmem:[#allocation0] ss:$8 sm:$0xf0]  }
  0x10   :  { %v129_v22 = vld [vmem:[#allocation0 + $0x42] ss:$8 sm:$0xf0]   ;;  %v108_v23 = vld [vmem:[#allocation0 + $0x43] ss:$8 sm:$0xf0]   ;;  %v83_v34 = vsel %vm82_vm0, %v81_v33, %v80_v32  ;;  %v142_v38 = vsel %vm82_vm0, %v140_v25, %v138_v24 }
  0x11   :  { %v150_v31 = vld [vmem:[#allocation0 + $0x41] ss:$8 sm:$0xf0]   ;;  %v89_v36 = vld [vmem:[#allocation0 + $0x40] ss:$8 sm:$0xf0]  }
  0x12   :  { %v127_v26 = vld [vmem:[#allocation0 + $0x42] ss:$8 sm:$0xf]   ;;  %v106_v27 = vld [vmem:[#allocation0 + $0x43] ss:$8 sm:$0xf]  }
  0x13   :  { %v131_v28 = vsel %vm82_vm0, %v129_v22, %v127_v26  ;;  %v110_v29 = vsel %vm82_vm0, %v108_v23, %v106_v27  ;;  %v148_v30 = vld [vmem:[#allocation0 + $0x41] ss:$8 sm:$0xf]   ;;  %v87_v35 = vld [vmem:[#allocation0 + $0x40] ss:$8 sm:$0xf]  }
  0x14   :  { %132 = vrot.lane.b32.xlu1 %v131_v28, %s194_s0  ;;  %111 = vrot.lane.b32.xlu0 %v110_v29, %s195_s9  ;;  %v152_v37 = vsel %vm82_vm0, %v150_v31, %v148_v30  ;;  %85 = vst.msk [vmem:[%s290_s1] sm:$0xff] %vm84_vm1, %v83_v34   ;;  %v91_v39 = vsel %vm82_vm0, %v89_v36, %v87_v35 }
  0x15   :  { %187 = vst.msk [vmem:[%s290_s1 + $0x8] sm:$0xff] %vm84_vm1, %v91_v39  }
  0x18   :  { %153 = vrot.lane.b32.xlu1 %v152_v37, %s196_s14  ;;  %143 = vrot.lane.b32.xlu0 %v142_v38, %s196_s14 }
  0x81   :  { %v123_v40 = vpop.permute.xlu1 %122   ;;  %v102_v41 = vpop.permute.xlu0 %101  }
  0x82   :  { %104 = vst.msk [vmem:[%s290_s1] sm:$0xff] %vm103_vm2, %v102_v41  }
  0x83   :  { %125 = vst.msk [vmem:[%s290_s1] sm:$0xff] %vm124_vm3, %v123_v40  }
  0x86   :  { %v133_v42 = vpop.permute.xlu1 %132   ;;  %v112_v43 = vpop.permute.xlu0 %111  }
  0x87   :  { %188 = vst.msk [vmem:[%s290_s1 + $0x8] sm:$0xff] %vm103_vm2, %v112_v43  }
  0x88   :  { %189 = vst.msk [vmem:[%s290_s1 + $0x8] sm:$0xff] %vm124_vm3, %v133_v42  }
  0x8a   :  { %v154_v44 = vpop.permute.xlu1 %153   ;;  %v144_v45 = vpop.permute.xlu0 %143  }
  0x8b   :  { %190 = vst.msk [vmem:[%s290_s1 + $0x8] sm:$0xff] %vm145_vm4, %v154_v44   ;;  %146 = vst.msk [vmem:[%s290_s1] sm:$0xff] %vm145_vm4, %v144_v45  }

// kernel: my_ata.1
= control target key start
LH: loop header
LB: loop body
LE: loop exit
PB: predicated region body
PF: predicated region fallthrough
CT: control target
= control target key end

     0   :  { %14 = vsyncpa [#allocation3], 0  ;;  %s2000_s0 = inlined_call_operand.vmem [shape: f32[2,2,16,64], index: 0, kind: input, shape index: {}]   ;;  %s2001_s1 = inlined_call_operand.vmem [shape: f32[2,16,64], index: 1, kind: input, shape index: {}]   ;;  %s2002_s2 = inlined_call_operand.vmem [shape: f32[2,16,64], index: 2, kind: input, shape index: {}]   ;;  %s2003_s3 = inlined_call_operand.vmem [shape: f32[16,64], index: 3, kind: input, shape index: {}]   ;;  %s2004_s4 = inlined_call_operand.vmem [shape: f32[32,32], index: 4, kind: input, shape index: {}]   ;;  %s2005_s5 = inlined_call_operand.vmem [shape: f32[32,32], index: 5, kind: input, shape index: {}]   ;;  %s2006_s6 = inlined_call_operand.vmem [shape: f32[64,64], index: 6, kind: input, shape index: {}]   ;;  %s2007_s7 = inlined_call_operand.vmem [shape: f32[64,64], index: 7, kind: input, shape index: {}]   ;;  %s2008_s8 = inlined_call_operand.vmem [shape: f32[64,16], index: 8, kind: input, shape index: {}]   ;;  %s2009_s9 = inlined_call_operand.hbm [shape: f32[2,2,16,16], index: 9, kind: output, shape index: {}]  }
   0x1   :  { %16 = vsyncpa [#allocation3 + $0x1], 0  ;;  %s1737_s30 = smov 0   ;;  %s1739_s10 = smov 0  }
   0x2   :  { %s1741_s11 = smov 0   ;;  %s1743_s12 = smov 0  }
   0x3 LB: > { %2013 = sst [smem:[#allocation5_spill]] %s1678_s11  ;;  %s1758_s13 = sadd.s32 4294967295, %s1682_s12   ;;  %s1682_s12 = sphi %s1743_s12, %s2018_s12   ;;  %s1678_s11 = sphi %s1741_s11, %s2020_s11   ;;  %s1674_s10 = sphi %s1739_s10, %s2022_s10   ;;  %s1670_s30 = sphi %s1737_s30, %s2021_s30  }
   0x4   : > { %s1213_s14 = sadd.s32 4294967294, %s1682_s12   ;;  %s1762_s15 = sadd.s32 1, %s1682_s12  }
   0x5   : > { %2014 = sst [smem:[#allocation6_spill]] %s1762_s15  ;;  %s233_s16 = sadd.s32 1, %s1678_s11 }
   0x6   : > { %s230_s17 = ssub.s32 %s1682_s12, %s1762_s15  ;;  %p243_p0 = scmp.ne.s32.totalorder %s1678_s11, %s1674_s10 }
   0x7   : > { %p231_p1 = scmp.eq.s32.totalorder %s230_s17, 0  ;;  %p244_p2 = scmp.eq.s32.totalorder %s1758_s13, 1 }
   0x8   : > { %p249_p3 = scmp.ne.s32.totalorder %s1674_s10, %s1670_s30  ;;  %p250_p4 = scmp.eq.s32.totalorder %s1213_s14, 1 }
   0x9   : > { %s1773_s18 = scalar_select %p231_p1, %s1678_s11, %s233_s16  }
   0xa   : > { %p1775_p5 = por %p244_p2, %p243_p0  ;;  %p1779_p6 = por %p250_p4, %p249_p3 }
   0xb   : > { %2015 = sst [smem:[#allocation7_spill]] %s1773_s18  ;;  %p1216_p7 = scmp.ge.s32.totalorder %s1682_s12, 1 }
   0xc   : > { %p310_p8 = scmp.lt.s32.totalorder %s1682_s12, 3 }
   0xe   : > { %p311_p9 = pnand %p1216_p7, %p310_p8 }
   0xf   : > { %p356_p10 = scmp.lt.s32.totalorder (!%p311_p9), %s1758_s13, 1  ;;  %v382_v0 = vld [vmem:[%s2004_s4] sm:$0xff] (!%p311_p9)  ;;  %vm426_vm0 = vcmask (!%p311_p9), 261120   ;;  %v391_v2 = vld [vmem:[%s2006_s6 + $0x8] sm:$0xff] (!%p311_p9)  ;;  %v392_v4 = vld [vmem:[%s2006_s6 + $0x10] sm:$0xff] (!%p311_p9)  ;;  %vm524_vm1 = vcmask (!%p311_p9), 523264  }
  0x10   : > { %314 = sbr.rel (%p311_p9) target bundleno = 1193 (0x4a9), region = 56  ;;  %1349 = vmatprep.mubr.msk.f32.mxu1 (!%p311_p9), %vm426_vm0, %v382_v0  ;;  %v390_v1 = vld [vmem:[%s2006_s6] sm:$0xff] (!%p311_p9)  ;;  %v393_v5 = vld [vmem:[%s2006_s6 + $0x18] sm:$0xff] (!%p311_p9)  ;;  %v395_v8 = vld [vmem:[%s2006_s6 + $0x28] sm:$0xff] (!%p311_p9)  ;;  %s353_s26 = sand.u32 (!%p311_p9), 1, %s1674_s10   ;;  %vm1107_vm2 = vcmask (!%p311_p9), 130048  }
  0x11   : > { %v1487_v3 = vpack.c.bf16 (!%p311_p9), %v391_v2, %v390_v1  ;;  %v1491_v6 = vpack.c.bf16 (!%p311_p9), %v393_v5, %v392_v4  ;;  %v394_v7 = vld [vmem:[%s2006_s6 + $0x20] sm:$0xff] (!%p311_p9)  ;;  %v396_v26 = vld [vmem:[%s2006_s6 + $0x30] sm:$0xff] (!%p311_p9)  ;;  %v397_v27 = vld [vmem:[%s2006_s6 + $0x38] sm:$0xff] (!%p311_p9) }
  0x12   : > { %v1495_v15 = vpack.c.bf16 (!%p311_p9), %v395_v8, %v394_v7  ;;  %v1499_v32 = vpack.c.bf16 (!%p311_p9), %v397_v27, %v396_v26  ;;  %v383_v35 = vld [vmem:[%s2004_s4 + $0x8] sm:$0xff] (!%p311_p9)  ;;  %v384_v36 = vld [vmem:[%s2004_s4 + $0x10] sm:$0xff] (!%p311_p9)  ;;  %v385_v37 = vld [vmem:[%s2004_s4 + $0x18] sm:$0xff] (!%p311_p9) }
  0x13   : > { %1520 = vmatprep.subr.bf16.mxu0 (!%p311_p9), %v1487_v3  ;;  %v398_v38 = vld [vmem:[%s2007_s7] sm:$0xff] (!%p311_p9)  ;;  %v399_v39 = vld [vmem:[%s2007_s7 + $0x8] sm:$0xff] (!%p311_p9)  ;;  %v400_v41 = vld [vmem:[%s2007_s7 + $0x10] sm:$0xff] (!%p311_p9) }
  0x14   : > { %1522 = vmatpush3.bf16.msra.mxu0 (!%p311_p9), %v1487_v3  ;;  %v1503_v40 = vpack.c.bf16 (!%p311_p9), %v399_v39, %v398_v38  ;;  %v401_v42 = vld [vmem:[%s2007_s7 + $0x18] sm:$0xff] (!%p311_p9)  ;;  %v402_v46 = vld [vmem:[%s2007_s7 + $0x20] sm:$0xff] (!%p311_p9)  ;;  %v403_v47 = vld [vmem:[%s2007_s7 + $0x28] sm:$0xff] (!%p311_p9) }
  0x15   : > { %1524 = vmatprep.subr.bf16.mxu0 (!%p311_p9), %v1491_v6  ;;  %v1507_v45 = vpack.c.bf16 (!%p311_p9), %v401_v42, %v400_v41  ;;  %v1511_v50 = vpack.c.bf16 (!%p311_p9), %v403_v47, %v402_v46  ;;  %v404_v51 = vld [vmem:[%s2007_s7 + $0x30] sm:$0xff] (!%p311_p9)  ;;  %v405_v52 = vld [vmem:[%s2007_s7 + $0x38] sm:$0xff] (!%p311_p9)  ;;  %v380_v62 = vld [vmem:[%s2003_s3] sm:$0xff] (!%p311_p9) }
  0x16   : > { %v1515_v53 = vpack.c.bf16 (!%p311_p9), %v405_v52, %v404_v51  ;;  %v381_v63 = vld [vmem:[%s2003_s3 + $0x8] sm:$0xff] (!%p311_p9)  ;;  %v386_v4 = vld [vmem:[%s2005_s5] sm:$0xff] (!%p311_p9)  ;;  %v408_v7 = vld [vmem:[%s2008_s8 + $0x10] sm:$0xff] (!%p311_p9) }
  0x17   : > { %s357_s27 = scalar_select %p356_p10, %s1758_s13, 1  ;;  %v406_v5 = vld [vmem:[%s2008_s8] sm:$0xff]  ;;  %v388_v26 = vld [vmem:[%s2005_s5 + $0x10] sm:$0xff]  ;;  %v389_v27 = vld [vmem:[%s2005_s5 + $0x18] sm:$0xff] }
  0x18   : > { %1526 = vmatpush3.bf16.msra.mxu0 %v1491_v6 }
  0x19   : > { %s1261_s17 = sshll.u32 %s357_s27, 5  ;;  %s1262_s21 = sshll.u32 %s357_s27, 4  ;;  %1528 = vmatprep.subr.bf16.mxu0 %v1495_v15 }
  0x1a   : > { %s360_s28 = scalar_lea.vmem %s2000_s0, %s1261_s17  ;;  %s365_s14 = scalar_lea.vmem %s2001_s1, %s1262_s21 }
  0x1b   : > { %s370_s15 = scalar_lea.vmem %s2002_s2, %s1262_s21  ;;  %v371_v9 = vld [vmem:[%s360_s28] sm:$0xff]  ;;  %v372_v10 = vld [vmem:[%s360_s28 + $0x8] sm:$0xff]  ;;  %v1224_v11 = vld [vmem:[%s360_s28 + $0x10] sm:$0xff]  ;;  %s1264_s27 = sshll.u32 %s1758_s13, 9 }
  0x1c   : > { %v1225_v12 = vld [vmem:[%s360_s28 + $0x18] sm:$0xff]  ;;  %v1818_v13 = vld [vmem:[%s365_s14] sm:$0xff]  ;;  %v1820_v14 = vld [vmem:[%s365_s14 + $0x8] sm:$0xff]  ;;  %1530 = vmatpush3.bf16.msra.mxu0 %v1495_v15  ;;  %s1217_s28 = sshll.u32 %s353_s26, 5  ;;  %s1957_s18 = scalar_lea.hbm %s2009_s9, %s1264_s27 }
  0x1d   : > { %v1822_v16 = vld [vmem:[%s370_s15] sm:$0xff]  ;;  %v1824_v17 = vld [vmem:[%s370_s15 + $0x8] sm:$0xff]  ;;  %v414_v18 = vmul.f32 %v1818_v13, %v371_v9  ;;  %v415_v19 = vmul.f32 %v1820_v14, %v372_v10  ;;  %v422_v20 = vmul.f32 %v1224_v11, %v1818_v13  ;;  %v423_v21 = vmul.f32 %v1225_v12, %v1820_v14  ;;  %1532 = vmatprep.subr.bf16.mxu0 %v1499_v32  ;;  %s355_s29 = scalar_lea.vmem [#allocation2], %s1217_s28  ;;  %s1959_s15 = scalar_lea.sflag [#allocation3], %s353_s26 }
  0x1e   : > { %v416_v22 = vmul.f32 %v1224_v11, %v1822_v16  ;;  %v417_v23 = vmul.f32 %v1225_v12, %v1824_v17  ;;  %v420_v24 = vmul.f32 %v1822_v16, %v371_v9  ;;  %v421_v25 = vmul.f32 %v1824_v17, %v372_v10  ;;  %v409_v9 = vld [vmem:[%s2008_s8 + $0x18] sm:$0xff]  ;;  %s1127_s14 = sshll.u32 %s355_s29, 4  ;;  %s1684_s17 = smov [#allocation2]   ;;  %s1952_s14 = int_to_ptr.vmem [resolvable:$true] %s1127_s14 }
  0x1f   : > { %v1563_v10 = vpack.c.bf16 %v409_v9, %v408_v7  ;;  %s1620_s13 = scalar_lea.vmem %s1952_s14, 512  ;;  %s1624_s21 = sshll.u32 %s1684_s17, 4  ;;  %s1625_s21 = int_to_ptr.vmem [resolvable:$false] %s1624_s21 }
  0x20   : > { %v418_v28 = vsub.f32 %v414_v18, %v416_v22  ;;  %v419_v29 = vsub.f32 %v415_v19, %v417_v23  ;;  %v424_v30 = vadd.f32 %v422_v20, %v420_v24  ;;  %v425_v31 = vadd.f32 %v423_v21, %v421_v25  ;;  %1534 = vmatpush3.bf16.msra.mxu0 %v1499_v32  ;;  %v387_v25 = vld [vmem:[%s2005_s5 + $0x8] sm:$0xff]  ;;  %p1621_p11 = scmp.ne.s32.totalorder %s1952_s14, %s1620_s13  ;;  %s1626_s22 = scalar_lea.vmem %s1625_s21, 1024 }
  0x21   : > { %1536 = vmatprep.subr.bf16.mxu0 %v1503_v40  ;;  %p1627_p0 = scmp.lt.s32.totalorder %s1952_s14, %s1625_s21  ;;  %p1628_p1 = scmp.lt.s32.totalorder %s1626_s22, %s1620_s13 }
  0x22   : > { %v1479_v33 = vpack.c.bf16 %v419_v29, %v418_v28  ;;  %v1483_v34 = vpack.c.bf16 %v425_v31, %v424_v30  ;;  %v410_v28 = vld [vmem:[%s2008_s8 + $0x20] sm:$0xff]  ;;  %v411_v29 = vld [vmem:[%s2008_s8 + $0x28] sm:$0xff]  ;;  %v412_v31 = vld [vmem:[%s2008_s8 + $0x30] sm:$0xff]  ;;  %p1622_p12 = pnand %p1621_p11, %p1775_p5 }
  0x23   : > { %v1567_v30 = vpack.c.bf16 %v411_v29, %v410_v28  ;;  %p1629_p2 = por %p1628_p1, %p1627_p0 }
  0x24   : > { %1480 = vmatprep.subr.bf16.mxu1 %v1479_v33  ;;  %p1623_p13 = pneg %p1622_p12 }
  0x25   : > { %1482 = vmatpush3.bf16.msra.mxu1 %v1479_v33 }
  0x26   : > { %1484 = vmatprep.subr.bf16.mxu1 %v1483_v34  ;;  %p1630_p3 = pnand %p1629_p2, %p1623_p13 }
  0x29   : > { %1486 = vmatpush3.bf16.msra.mxu1 %v1483_v34 }
  0x2a   : > { %1488 = vmatprep.subr.bf16.mxu1 %v1487_v3 }
  0x2c   : > { %1350 = vmatmul.mubr.msk.f32.vlgmr.msra.gmra.mrb[0].mxu1 %vm426_vm0, %v383_v35 }
  0x2d   : > { %1352 = vmatprep.mubr.msk.f32.mxu1 %vm426_vm0, %v384_v36  ;;  %1490 = vmatpush3.bf16.msra.mxu1 %v1487_v3 }
  0x2e   : > { %1492 = vmatprep.subr.bf16.mxu1 %v1491_v6 }
  0x30   : > { %1353 = vmatmul.mubr.msk.f32.gmra.mrb[2].mxu1 %vm426_vm0, %v385_v37 }
  0x31   : > { %1494 = vmatpush3.bf16.msra.mxu1 %v1491_v6  ;;  %v407_v6 = vld [vmem:[%s2008_s8 + $0x8] sm:$0xff] }
  0x32   : > { %1496 = vmatprep.subr.bf16.mxu1 %v1495_v15  ;;  %v1559_v8 = vpack.c.bf16 %v407_v6, %v406_v5 }
  0x35   : > { %1498 = vmatpush3.bf16.msra.mxu1 %v1495_v15 }
  0x36   : > { %1500 = vmatprep.subr.bf16.mxu1 %v1499_v32 }
  0x39   : > { %1502 = vmatpush3.bf16.msra.mxu1 %v1499_v32  ;;  %v413_v32 = vld [vmem:[%s2008_s8 + $0x38] sm:$0xff] }
  0x3a   : > { %1504 = vmatprep.subr.bf16.mxu1 %v1503_v40  ;;  %v1571_v33 = vpack.c.bf16 %v413_v32, %v412_v31 }
  0xff   : > { %v1351_v43 = vpop.f32.mrb[0].mxu1 }
 0x100   : > { %v505_v44 = vpop.f32.mrb[1].mxu1 }
 0x101   : > { %1371 = vmatprep.mubr.msk.f32.mxu1 %vm524_vm1, %v505_v44 }
 0x102   : > { %1372 = vmatmul.mubr.msk.f32.vlgmr.msra.gmra.mrb[4].mxu1 %vm524_vm1, %v1351_v43 }
 0x103   : > { %1506 = vmatpush3.bf16.msra.mxu1 %v1503_v40  ;;  %v1354_v48 = vpop.f32.mrb[2].mxu1 }
 0x104   : > { %v515_v49 = vpop.f32.mrb[3].mxu1  ;;  %1508 = vmatprep.subr.bf16.mxu1 %v1507_v45 }
 0x105   : > { %1374 = vmatprep.mubr.msk.f32.mxu1 %vm524_vm1, %v515_v49 }
 0x106   : > { %1375 = vmatmul.mubr.msk.f32.gmra.mrb[6].mxu1 %vm524_vm1, %v1354_v48 }
 0x107   : > { %1510 = vmatpush3.bf16.msra.mxu1 %v1507_v45  ;;  %1393 = vmatprep.mubr.msk.f32.mxu1 %vm524_vm1, %v505_v44 }
 0x108   : > { %1512 = vmatprep.subr.bf16.mxu1 %v1511_v50 }
 0x10b   : > { %1514 = vmatpush3.bf16.msra.mxu1 %v1511_v50 }
 0x10c   : > { %1516 = vmatprep.subr.bf16.mxu1 %v1515_v53 }
 0x10f   : > { %1518 = vmatpush3.bf16.msra.mxu1 %v1515_v53 }
 0x112   : > { %1394 = vmatmul.mubr.msk.f32.vlgmr.msra.gmra.mrb[6].mxu1 %vm524_vm1, %v1351_v43 }
 0x113   : > { %1396 = vmatprep.mubr.msk.f32.mxu1 %vm524_vm1, %v515_v49 }
 0x116   : > { %1397 = vmatmul.mubr.msk.f32.gmra.mrb[8].mxu1 %vm524_vm1, %v1354_v48 }
 0x117   : > { %1451 = vmatprep.mubr.msk.f32.mxu1 %vm426_vm0, %v386_v4 }
 0x1d5   : > { %v1373_v54 = vpop.f32.mrb[4].mxu1 }
 0x1d6   : > { %v603_v55 = vpop.f32.mrb[5].mxu1 }
 0x1e5   : > { %v1395_v56 = vpop.f32.mrb[6].mxu1 }
 0x1e6   : > { %v688_v57 = vpop.f32.mrb[7].mxu1  ;;  %v714_v3 = vmul.f32 %v1395_v56, %v381_v63 }
 0x1e7   : > { %v713_v2 = vmul.f32 %v688_v57, %v380_v62 }
 0x1e9   : > { %v1398_v58 = vpop.f32.mrb[8].mxu1 }
 0x1ea   : > { %v708_v59 = vsub.f32 %v1373_v54, %v1398_v58  ;;  %v698_v60 = vpop.f32.mrb[9].mxu1 }
 0x1eb   : > { %v707_v61 = vsub.f32 %v603_v55, %v698_v60 }
 0x1ec   : > { %v712_v1 = vmul.f32 %v708_v59, %v381_v63 }
 0x1ed   : > { %v711_v0 = vmul.f32 %v707_v61, %v380_v62 }
 0x1ef   : > { %1415 = vmatprep.mubr.msk.f32.mxu0 %vm524_vm1, %v711_v0 }
 0x1f0   : > { %1416 = vmatmul.mubr.msk.f32.vlgmr.msra.gmra.mrb[0].mxu0 %vm524_vm1, %v712_v1 }
 0x1f1   : > { %1538 = vmatpush3.bf16.msra.mxu0 %v1503_v40  ;;  %1418 = vmatprep.mubr.msk.f32.mxu0 %vm524_vm1, %v713_v2 }
 0x1f2   : > { %1540 = vmatprep.subr.bf16.mxu0 %v1507_v45 }
 0x1f4   : > { %1419 = vmatmul.mubr.msk.f32.gmra.mrb[2].mxu0 %vm524_vm1, %v714_v3 }
 0x1f5   : > { %1542 = vmatpush3.bf16.msra.mxu0 %v1507_v45  ;;  %1437 = vmatprep.mubr.msk.f32.mxu0 %vm524_vm1, %v711_v0 }
 0x1f6   : > { %1544 = vmatprep.subr.bf16.mxu0 %v1511_v50 }
 0x1f9   : > { %1546 = vmatpush3.bf16.msra.mxu0 %v1511_v50 }
 0x1fa   : > { %1548 = vmatprep.subr.bf16.mxu0 %v1515_v53 }
 0x1fd   : > { %1550 = vmatpush3.bf16.msra.mxu0 %v1515_v53 }
 0x1fe   : > { %1560 = vmatprep.subr.bf16.mxu0 %v1559_v8 }
 0x200   : > { %1438 = vmatmul.mubr.msk.f32.vlgmr.msra.gmra.mrb[4].mxu0 %vm524_vm1, %v712_v1 }
 0x201   : > { %1440 = vmatprep.mubr.msk.f32.mxu0 %vm524_vm1, %v713_v2  ;;  %1562 = vmatpush3.bf16.msra.mxu0 %v1559_v8 }
 0x202   : > { %1564 = vmatprep.subr.bf16.mxu0 %v1563_v10 }
 0x204   : > { %1441 = vmatmul.mubr.msk.f32.gmra.mrb[0].mxu0 %vm524_vm1, %v714_v3 }
 0x205   : > { %1566 = vmatpush3.bf16.msra.mxu0 %v1563_v10 }
 0x206   : > { %1568 = vmatprep.subr.bf16.mxu0 %v1567_v30 }
 0x209   : > { %1570 = vmatpush3.bf16.msra.mxu0 %v1567_v30 }
 0x20a   : > { %1572 = vmatprep.subr.bf16.mxu0 %v1571_v33 }
 0x20d   : > { %1574 = vmatpush3.bf16.msra.mxu0 %v1571_v33 }
 0x2c7   : > { %v1420_v11 = vpop.f32.mrb[2].mxu0 }
 0x2c8   : > { %v803_v12 = vpop.f32.mrb[3].mxu0 }
 0x2d3   : > { %v1439_v15 = vpop.f32.mrb[4].mxu0 }
 0x2d4   : > { %v900_v18 = vsub.f32 %v1420_v11, %v1439_v15  ;;  %v878_v19 = vpop.f32.mrb[5].mxu0 }
 0x2d5   : > { %v899_v20 = vsub.f32 %v803_v12, %v878_v19 }
 0x2d7   : > { %v1555_v21 = vpack.c.bf16 %v900_v18, %v899_v20  ;;  %v1442_v22 = vpop.f32.mrb[0].mxu0 }
 0x2d8   : > { %v888_v23 = vpop.f32.mrb[1].mxu0 }
 0x2d9   : > { %v1551_v24 = vpack.c.bf16 %v1442_v22, %v888_v23 }
 0x2db   : > { %1552 = vmatprep.subr.bf16.mxu1 %v1551_v24 }
 0x2dc   : > { %1554 = vmatpush3.bf16.msra.mxu1 %v1551_v24 }
 0x2dd   : > { %1556 = vmatprep.subr.bf16.mxu1 %v1555_v21 }
 0x2e0   : > { %1558 = vmatpush3.bf16.msra.mxu1 %v1555_v21 }
 0x2e3   : > { %1452 = vmatmul.mubr.msk.f32.vlgmr.msra.gmra.mrb[10].mxu1 %vm426_vm0, %v387_v25 }
 0x2e4   : > { %1454 = vmatprep.mubr.msk.f32.mxu1 %vm426_vm0, %v388_v26 }
 0x2e7   : > { %1455 = vmatmul.mubr.msk.f32.gmra.mrb[12].mxu1 %vm426_vm0, %v389_v27 }
 0x3b6   : > { %v1453_v34 = vpop.f32.mrb[10].mxu1 }
 0x3b7   : > { %v979_v35 = vpop.f32.mrb[11].mxu1  ;;  %v999_v37 = vmul.f32 %v1453_v34, %v1820_v14  ;;  %v1007_v38 = vmul.f32 %v1453_v34, %v1824_v17 }
 0x3b8   : > { %v998_v42 = vmul.f32 %v979_v35, %v1818_v13  ;;  %v1006_v43 = vmul.f32 %v979_v35, %v1822_v16 }
 0x3ba   : > { %v1456_v36 = vpop.f32.mrb[12].mxu1 }
 0x3bb   : > { %v1001_v39 = vmul.f32 %v1456_v36, %v1824_v17  ;;  %v1005_v40 = vmul.f32 %v1456_v36, %v1820_v14  ;;  %v989_v41 = vpop.f32.mrb[13].mxu1 }
 0x3bc   : > { %v1000_v44 = vmul.f32 %v989_v41, %v1822_v16  ;;  %v1004_v45 = vmul.f32 %v989_v41, %v1818_v13 }
 0x3bd   : > { %v1003_v46 = vadd.f32 %v1001_v39, %v999_v37  ;;  %v1009_v47 = vsub.f32 %v1005_v40, %v1007_v38 }
 0x3be   : > { %v1002_v48 = vadd.f32 %v1000_v44, %v998_v42  ;;  %v1008_v49 = vsub.f32 %v1004_v45, %v1006_v43 }
 0x3c0   : > { %1473 = vmatprep.mubr.msk.f32.mxu0 %vm524_vm1, %v1002_v48 }
 0x3c1   : > { %1474 = vmatmul.mubr.msk.f32.vlgmr.msra.gmra.mrb[6].mxu0 %vm524_vm1, %v1003_v46 }
 0x3c2   : > { %1476 = vmatprep.mubr.msk.f32.mxu0 %vm524_vm1, %v1008_v49 }
 0x3c5   : > { %1477 = vmatmul.mubr.msk.f32.gmra.mrb[8].mxu0 %vm524_vm1, %v1009_v47 }
 0x494   : > { %v1475_v14 = vpop.f32.mrb[6].mxu0 }
 0x495   : > { %1109 = vst.msk [vmem:[%s355_s29 + $0x8] sm:$0xff] %vm1107_vm2, %v1475_v14  ;;  %v1088_v13 = vpop.f32.mrb[7].mxu0 }
 0x496   : > { %1108 = vst.msk [vmem:[%s355_s29] sm:$0xff] %vm1107_vm2, %v1088_v13 }
 0x498   : > { %v1478_v16 = vpop.f32.mrb[8].mxu0 }
 0x499   : > { %1255 = vst.msk [vmem:[%s355_s29 + $0x18] sm:$0xff] %vm1107_vm2, %v1478_v16  ;;  %v1098_v17 = vpop.f32.mrb[9].mxu0 }
 0x49a   : > { %1254 = vst.msk [vmem:[%s355_s29 + $0x10] sm:$0xff] %vm1107_vm2, %v1098_v17 }
 0x49b   : > { %1633 = shalt.err (!%p1630_p3)
}
 0x49c   : > { %s1634_s23 = scalar_lea.hbm %s1957_s18, 512  ;;  %s1638_s26 = scalar_lea.hbm %s2009_s9, 1024 }
 0x49d   : > { %p1635_p4 = scmp.ne.s32.totalorder %s1957_s18, %s1634_s23  ;;  %p1639_p9 = scmp.lt.u32.totalorder %s1957_s18, %s2009_s9 }
 0x49e   : > { %p1640_p10 = scmp.lt.u32.totalorder %s1638_s26, %s1634_s23  ;;  %p1642_p12 = scmp.lt.u32.totalorder %s1634_s23, %s1957_s18 }
 0x49f   : > { %p1636_p7 = pnand %p1635_p4, %p1775_p5 }
 0x4a0   : > { %p1641_p11 = por %p1640_p10, %p1639_p9 }
 0x4a1   : > { %p1637_p8 = pneg %p1636_p7 }
 0x4a2   : > { %p1643_p13 = por %p1642_p12, %p1641_p11 }
 0x4a4   : > { %p1644_p0 = pnand %p1643_p13, %p1637_p8 }
 0x4a6   : > { %1647 = shalt.err (!%p1644_p0)
}
 0x4a7   : > { %s1685_s27 = smov 128   ;;  %s1686_s16 = smov 8  }
 0x4a8   : > { %1579 = dma.vmem_to_hbm [thread:$0]  (%p1775_p5), %s1952_s14, 512, %s1957_s18, %s1959_s15, %s1685_s27, %s1685_s27, %s1686_s16  }
 0x4a9 PF: > { %p1585_p1 = scmp.ge.s32.totalorder %s1682_s12, 2  ;;  %s1142_s11 = sand.u32 1, %s1670_s30  }
 0x4aa   : > { %s1143_s13 = scalar_lea.sflag [#allocation3], %s1142_s11 }
 0x4ab   : > { %p1582_p2 = pnand %p1585_p1, %p1779_p6 }
 0x4ad   : > { %1665 = dma.done.wait (!%p1582_p2), %s1143_s13, 512  }
 0x4ae   : > { %1667 = vsyncadd (!%p1582_p2), %s1143_s13, 4294966784  ;;  %s2018_s12 = sld [smem:[#allocation6_spill]]  ;;  %s2019_s17 = sld [smem:[#allocation5_spill]] }
 0x4af   : > { %s2020_s11 = sld [smem:[#allocation7_spill]]  ;;  %s2021_s30 = smov %s1674_s10 }
 0x4b4   : > { %p19_p3 = scmp.ge.s32.totalorder %s2018_s12, 4   ;;  %s2022_s10 = smov %s2019_s17 }
 0x4b6   :  { %21 = sbr.rel (!%p19_p3) target bundleno = 3 (0x3), region = 99 }
 0x4bd   :  { %1148 = vsyncpa [#allocation3], 1 }
 0x4be   :  { %1150 = vsyncpa [#allocation3 + $0x1], 1 }

</bundles_post_ra>
